<compile_context>
chip_gen: v6e
topology: v6e:2x2x1
jax: 0.10.0
libtpu: 0.0.40
codegen_flags: <defaults>
</compile_context>

<pallas_src>
import functools

import jax
import jax.numpy as jnp
from jax.experimental import pallas as pl
from jax.experimental.pallas import tpu as pltpu


# --------------------------------------------------------------------------
# Generation-aware VMEM budgets.
# --------------------------------------------------------------------------
@functools.lru_cache(maxsize=None)
def _vmem_budget_bytes():
    """Scoped-VMEM budget per kernel, safely under physical VMEM per core."""
    try:
        kind = jax.devices()[0].device_kind.lower()
    except Exception:  # pragma: no cover - conservative fallback
        kind = ""
    if "v5" in kind or "v6" in kind:
        return 96 << 20   # 128 MiB physical VMEM per TensorCore
    return 48 << 20       # v7x (64 MiB per TensorCore) and unknown chips


def _budgets():
    budget = _vmem_budget_bytes()
    # Fused path holds 2x-buffered in + out slabs plus f32 temporaries.
    fused_slab_max = budget // 6
    # Streaming passes hold up to 4 double-buffered (c, tile_n) tiles + temps.
    per_buf_max = budget // 12
    return budget, fused_slab_max, per_buf_max


# --------------------------------------------------------------------------
# Fused single-pass path (per-batch slab fits VMEM): 1 read + 1 write of x.
# --------------------------------------------------------------------------
def _fused_kernel(x_ref, w1_ref, w2_ref, o_ref, *, inv_hw):
    # x_ref/o_ref: (c, N) -- leading batch dim squeezed; weights full-extent.
    x32 = x_ref[...].astype(jnp.float32)
    pooled = jnp.sum(x32 * x32, axis=-1, keepdims=True) * inv_hw       # (c, 1)
    h1 = jnp.maximum(
        jnp.dot(w1_ref[...].astype(jnp.float32), pooled,
                preferred_element_type=jnp.float32), 0.0)              # (c//r, 1)
    gate = jax.nn.sigmoid(
        jnp.dot(w2_ref[...].astype(jnp.float32), h1,
                preferred_element_type=jnp.float32))                   # (c, 1)
    # Multiply in f32 (matches the reference), cast once on the store.
    o_ref[...] = (x32 * gate).astype(o_ref.dtype)


def _fused_call(xf, w1, w2, inv_hw, vmem_limit):
    b, c, n = xf.shape
    kernel = functools.partial(_fused_kernel, inv_hw=inv_hw)
    return pl.pallas_call(
        kernel,
        out_shape=jax.ShapeDtypeStruct((b, c, n), xf.dtype),
        grid_spec=pltpu.PrefetchScalarGridSpec(
            num_scalar_prefetch=0,
            grid=(b,),
            in_specs=[
                pl.BlockSpec((None, c, n), lambda i: (i, 0, 0)),
                pl.BlockSpec(w1.shape, lambda i: (0, 0)),
                pl.BlockSpec(w2.shape, lambda i: (0, 0)),
            ],
            out_specs=pl.BlockSpec((None, c, n), lambda i: (i, 0, 0)),
        ),
        compiler_params=pltpu.CompilerParams(
            dimension_semantics=("parallel",),
            vmem_limit_bytes=vmem_limit),
    )(xf, w1, w2)


# --------------------------------------------------------------------------
# Streaming two-pass path.
# Pass 1: pooled sum-of-squares (resident f32 accumulator) + MLP -> gate.
# Pass 2: bare load -> f32 gate multiply -> lane-dense store.
# --------------------------------------------------------------------------
def _pool_gate_kernel(x_ref, w1_ref, w2_ref, gate_ref, acc_ref,
                      *, inv_hw, n, tile_n, mask_tail):
    # x_ref: (c, tile_n); gate_ref: (c, 1) f32; acc_ref: (c, 1) f32 scratch.
    k = pl.program_id(1)

    @pl.when(k == 0)
    def _():
        acc_ref[...] = jnp.zeros_like(acc_ref)

    xt = x_ref[...].astype(jnp.float32)
    sq = xt * xt
    if mask_tail:
        # Only the last tile is ragged; for full tiles rem >= tile_n so the
        # mask is all-true. Out-of-bounds lanes hold garbage and must not
        # reach the reduction.
        lane = jax.lax.broadcasted_iota(jnp.int32, sq.shape, 1)
        rem = n - k * tile_n
        sq = jnp.where(lane < rem, sq, 0.0)
    acc_ref[...] += jnp.sum(sq, axis=-1, keepdims=True)

    @pl.when(k == pl.num_programs(1) - 1)
    def _():
        # Squeeze-excite MLP folded into the finalize step (tiny FLOPs; keeps
        # the gate production inside pass 1, no extra XLA ops in between).
        pooled = acc_ref[...] * inv_hw                                 # (c, 1)
        h1 = jnp.maximum(
            jnp.dot(w1_ref[...].astype(jnp.float32), pooled,
                    preferred_element_type=jnp.float32), 0.0)          # (c//r, 1)
        gate_ref[...] = jax.nn.sigmoid(
            jnp.dot(w2_ref[...].astype(jnp.float32), h1,
                    preferred_element_type=jnp.float32))               # (c, 1)


def _scale_kernel(gate_ref, x_ref, o_ref):
    # gate_ref: (c, 1) f32; x_ref/o_ref: (c, tile_n).
    # Ragged edge blocks need no mask: OOB lanes are dropped on the store.
    o_ref[...] = (x_ref[...].astype(jnp.float32) * gate_ref[...]).astype(o_ref.dtype)


def _pool_gate_call(xf, w1, w2, tile_n, inv_hw, vmem_limit):
    b, c, n = xf.shape
    n_tiles = pl.cdiv(n, tile_n)
    kernel = functools.partial(_pool_gate_kernel, inv_hw=inv_hw, n=n,
                               tile_n=tile_n, mask_tail=(n % tile_n != 0))
    # Note: with very small b on v7x this pass uses one TensorCore; splitting
    # the N axis into an extra "parallel" outer axis (partial sums reduced
    # outside) would engage both cores, but pass 2 dominates traffic so the
    # simpler structure is kept.
    return pl.pallas_call(
        kernel,
        out_shape=jax.ShapeDtypeStruct((b, c, 1), jnp.float32),
        grid_spec=pltpu.PrefetchScalarGridSpec(
            num_scalar_prefetch=0,
            grid=(b, n_tiles),
            in_specs=[
                pl.BlockSpec((None, c, tile_n), lambda i, k: (i, 0, k)),
                pl.BlockSpec(w1.shape, lambda i, k: (0, 0)),
                pl.BlockSpec(w2.shape, lambda i, k: (0, 0)),
            ],
            out_specs=pl.BlockSpec((None, c, 1), lambda i, k: (i, 0, 0)),
            scratch_shapes=[pltpu.VMEM((c, 1), jnp.float32)],
        ),
        compiler_params=pltpu.CompilerParams(
            dimension_semantics=("parallel", "arbitrary"),
            vmem_limit_bytes=vmem_limit),
    )(xf, w1, w2)


def _scale_call(gate, xf, tile_n, vmem_limit):
    b, c, n = xf.shape
    n_tiles = pl.cdiv(n, tile_n)
    return pl.pallas_call(
        _scale_kernel,
        out_shape=jax.ShapeDtypeStruct((b, c, n), xf.dtype),
        grid_spec=pltpu.PrefetchScalarGridSpec(
            num_scalar_prefetch=0,
            grid=(b, n_tiles),
            in_specs=[
                pl.BlockSpec((None, c, 1), lambda i, k: (i, 0, 0)),
                pl.BlockSpec((None, c, tile_n), lambda i, k: (i, 0, k)),
            ],
            out_specs=pl.BlockSpec((None, c, tile_n), lambda i, k: (i, 0, k)),
        ),
        compiler_params=pltpu.CompilerParams(
            dimension_semantics=("parallel", "parallel"),
            vmem_limit_bytes=vmem_limit),
    )(gate, xf)


# --------------------------------------------------------------------------
# Tile selection + wrapper.
# --------------------------------------------------------------------------
def _pick_tile_n(c, n, itemsize, per_buf_max):
    """Largest lane-dense tile (multiple of 128) whose (c, tile_n) buffer fits
    the per-buffer budget; full extent if N already fits (legal for any N)."""
    row_bytes = max(1, c * itemsize)
    max_lanes = max(128, (per_buf_max // row_bytes) // 128 * 128)
    if n <= max_lanes:
        return n
    return max_lanes


def _calayer_pallas_impl(x, w1, w2, *, force_two_pass=False, max_tile_bytes=None):
    """x: (b, c, h, w, d); w1: (c//r, c); w2: (c, c//r)."""
    b, c, h, w, d = x.shape
    n = h * w * d
    inv_hw = 1.0 / float(h * w)
    itemsize = jnp.dtype(x.dtype).itemsize
    xf = x.reshape(b, c, n)

    vmem_limit, fused_slab_max, per_buf_max = _budgets()
    if max_tile_bytes is not None:           # test hook: force small tiles
        per_buf_max = int(max_tile_bytes)

    # Fast path: whole (c, N) slab small enough for fused 1-read + 1-write.
    if not force_two_pass and c * n * itemsize <= fused_slab_max:
        out = _fused_call(xf, w1, w2, inv_hw, vmem_limit)
        return out.reshape(b, c, h, w, d)

    # Streaming path: no padding -- cdiv grid, ragged tail masked in pass 1.
    tile_n = _pick_tile_n(c, n, itemsize, per_buf_max)
    gate = _pool_gate_call(xf, w1, w2, tile_n, inv_hw, vmem_limit)  # (b, c, 1) f32
    out = _scale_call(gate, xf, tile_n, vmem_limit)
    return out.reshape(b, c, h, w, d)


calayer_pallas = jax.jit(_calayer_pallas_impl,
                         static_argnames=("force_two_pass", "max_tile_bytes"))


def calayer_ref(x, w1, w2):
    """Pure-JAX reference matching the PyTorch forward."""
    x32 = x.astype(jnp.float32)
    x_abs = jnp.sum(x32 * x32, axis=-1)                 # (b, c, h, w)
    y = jnp.mean(x_abs, axis=(2, 3))                    # (b, c)
    y = jnp.maximum(y @ w1.T, 0.0)                      # (b, c//r)
    y = jax.nn.sigmoid(y @ w2.T)                        # (b, c)
    return (x32 * y[:, :, None, None, None]).astype(x.dtype)


if __name__ == "__main__":
    key = jax.random.PRNGKey(0)
    k1, k2, kx1, kx2, kx3 = jax.random.split(key, 5)

    reduction = 8
    c = 16
    # Linear(channel, channel//reduction, bias=False): weight (out, in)
    w1 = 0.1 * jax.random.normal(k1, (c // reduction, c), dtype=jnp.float32)
    # Linear(channel//reduction, channel, bias=False): weight (out, in)
    w2 = 0.1 * jax.random.normal(k2, (c, c // reduction), dtype=jnp.float32)

    # Case 1: small slab -> fused single-pass path.
    x1 = jax.random.normal(kx1, (2, c, 8, 8, 4), dtype=jnp.float32)
    out1 = jax.block_until_ready(calayer_pallas(x1, w1, w2))
    ref1 = calayer_ref(x1, w1, w2)
    assert out1.shape == x1.shape
    assert jnp.allclose(out1, ref1, atol=1e-5, rtol=1e-5)

    # Case 2: streaming two-pass path with multi-tile N and a ragged tail
    # (N = 2880, forced tile_n = 256 -> 12 tiles, last tile masks 192 lanes).
    x2 = jax.random.normal(kx2, (2, c, 12, 12, 20), dtype=jnp.float32)
    out2 = jax.block_until_ready(
        calayer_pallas(x2, w1, w2, force_two_pass=True, max_tile_bytes=16 * 1024))
    ref2 = calayer_ref(x2, w1, w2)
    assert out2.shape == x2.shape
    assert jnp.allclose(out2, ref2, atol=1e-5, rtol=1e-5)

    # Case 3: streaming path with default (large) tiles -> single full-extent
    # tile, batch of 1.
    x3 = jax.random.normal(kx3, (1, c, 10, 10, 7), dtype=jnp.float32)
    out3 = jax.block_until_ready(calayer_pallas(x3, w1, w2, force_two_pass=True))
    ref3 = calayer_ref(x3, w1, w2)
    assert out3.shape == x3.shape
    assert jnp.allclose(out3, ref3, atol=1e-5, rtol=1e-5)

    print("KERNEL_OK")
</pallas_src>

<mosaic_0001>
module attributes {stable_mosaic.version = 11 : i64} {
  func.func @_fused_kernel(%arg0: i32, %arg1: memref<1x16x256xf32, #tpu.memory_space<vmem>>, %arg2: memref<2x16xf32, #tpu.memory_space<vmem>>, %arg3: memref<16x2xf32, #tpu.memory_space<vmem>>, %arg4: memref<1x16x256xf32, #tpu.memory_space<vmem>>) attributes {dimension_semantics = [#tpu.dimension_semantics<parallel>], iteration_bounds = array<i64: 2>, scalar_prefetch = 0 : i64, scratch_operands = 0 : i64, tpu.core_type = #tpu.core_type<tc>, window_params = [{transform_indices = @transform_0, window_bounds = array<i64: 1, 16, 256>}, {pipeline_mode = #tpu.pipeline_mode<synchronous>, transform_indices = @transform_1, window_bounds = array<i64: 2, 16>}, {pipeline_mode = #tpu.pipeline_mode<synchronous>, transform_indices = @transform_2, window_bounds = array<i64: 16, 2>}, {transform_indices = @transform_3, window_bounds = array<i64: 1, 16, 256>}]} {
    %c0 = arith.constant 0 : index
    %c0_0 = arith.constant 0 : index
    %c0_1 = arith.constant 0 : index
    %0 = vector.load %arg1[%c0, %c0_0, %c0_1] : memref<1x16x256xf32, #tpu.memory_space<vmem>>, vector<1x16x256xf32>
    %1 = vector.shape_cast %0 : vector<1x16x256xf32> to vector<16x256xf32>
    %2 = arith.mulf %1, %1 : vector<16x256xf32>
    %cst = arith.constant dense<0.000000e+00> : vector<16xf32>
    %3 = vector.multi_reduction <add>, %2, %cst [1] : vector<16x256xf32> to vector<16xf32>
    %4 = vector.shape_cast %3 : vector<16xf32> to vector<16x1xf32>
    %cst_2 = arith.constant 1.562500e-02 : f32
    %5 = vector.broadcast %cst_2 : f32 to vector<16x1xf32>
    %6 = arith.mulf %4, %5 : vector<16x1xf32>
    %c0_3 = arith.constant 0 : index
    %c0_4 = arith.constant 0 : index
    %7 = vector.load %arg2[%c0_3, %c0_4] : memref<2x16xf32, #tpu.memory_space<vmem>>, vector<2x16xf32>
    %cst_5 = arith.constant dense<0.000000e+00> : vector<2x1xf32>
    %8 = tpu.matmul %7, %6, %cst_5 {dimension_numbers = #tpu.dot_dimension_numbers<[1], [0], [0], [1], [0, 0, 1, 1], [], []>} : vector<2x16xf32>, vector<16x1xf32>, vector<2x1xf32> -> vector<2x1xf32>
    %cst_6 = arith.constant 0.000000e+00 : f32
    %9 = vector.broadcast %cst_6 : f32 to vector<2x1xf32>
    %10 = arith.maximumf %8, %9 : vector<2x1xf32>
    %c0_7 = arith.constant 0 : index
    %c0_8 = arith.constant 0 : index
    %11 = vector.load %arg3[%c0_7, %c0_8] : memref<16x2xf32, #tpu.memory_space<vmem>>, vector<16x2xf32>
    %cst_9 = arith.constant dense<0.000000e+00> : vector<16x1xf32>
    %12 = tpu.matmul %11, %10, %cst_9 {dimension_numbers = #tpu.dot_dimension_numbers<[1], [0], [0], [1], [0, 0, 1, 1], [], []>} : vector<16x2xf32>, vector<2x1xf32>, vector<16x1xf32> -> vector<16x1xf32>
    %13 = arith.negf %12 : vector<16x1xf32>
    %14 = math.exp %13 : vector<16x1xf32>
    %cst_10 = arith.constant 1.000000e+00 : f32
    %15 = vector.broadcast %cst_10 : f32 to vector<16x1xf32>
    %16 = arith.addf %15, %14 : vector<16x1xf32>
    %17 = arith.divf %15, %16 : vector<16x1xf32>
    %18 = vector.broadcast %17 : vector<16x1xf32> to vector<16x256xf32>
    %19 = arith.mulf %1, %18 : vector<16x256xf32>
    %c0_11 = arith.constant 0 : index
    %c0_12 = arith.constant 0 : index
    %c0_13 = arith.constant 0 : index
    %20 = vector.load %arg4[%c0_11, %c0_12, %c0_13] : memref<1x16x256xf32, #tpu.memory_space<vmem>>, vector<1x16x256xf32>
    %21 = vector.shape_cast %20 : vector<1x16x256xf32> to vector<16x256xf32>
    %22 = vector.shape_cast %19 : vector<16x256xf32> to vector<1x16x256xf32>
    tpu.vector_store %arg4[%c0_11, %c0_12, %c0_13], %22 {strides = array<i32>} : memref<1x16x256xf32, #tpu.memory_space<vmem>>, vector<1x16x256xf32>,
    return
  }
  func.func @transform_0(%arg0: i32) -> (i32, i32, i32) {
    %c0_i32 = arith.constant 0 : i32
    %c0_i32_0 = arith.constant 0 : i32
    %c0_i32_1 = arith.constant 0 : i32
    return %arg0, %c0_i32, %c0_i32_0 : i32, i32, i32
  }
  func.func @transform_1(%arg0: i32) -> (i32, i32) {
    %c0_i32 = arith.constant 0 : i32
    %c0_i32_0 = arith.constant 0 : i32
    %c0_i32_1 = arith.constant 0 : i32
    return %c0_i32, %c0_i32_0 : i32, i32
  }
  func.func @transform_2(%arg0: i32) -> (i32, i32) {
    %c0_i32 = arith.constant 0 : i32
    %c0_i32_0 = arith.constant 0 : i32
    %c0_i32_1 = arith.constant 0 : i32
    return %c0_i32, %c0_i32_0 : i32, i32
  }
  func.func @transform_3(%arg0: i32) -> (i32, i32, i32) {
    %c0_i32 = arith.constant 0 : i32
    %c0_i32_0 = arith.constant 0 : i32
    %c0_i32_1 = arith.constant 0 : i32
    return %arg0, %c0_i32, %c0_i32_0 : i32, i32, i32
  }
}

</mosaic_0001>

<bundles_post_ra>
// kernel: _calayer_pallas_impl.1
= control target key start
LH: loop header
LB: loop body
LE: loop exit
PB: predicated region body
PF: predicated region fallthrough
CT: control target
= control target key end

     0   :  { %s525_s12 = smov 0   ;;  %s568_s0 = inlined_call_operand.vmem [shape: f32[2,16,256], index: 0, kind: input, shape index: {}]   ;;  %s569_s1 = inlined_call_operand.vmem [shape: f32[2,16], index: 1, kind: input, shape index: {}]   ;;  %s570_s2 = inlined_call_operand.vmem [shape: f32[16,2], index: 2, kind: input, shape index: {}]   ;;  %s571_s3 = inlined_call_operand.vmem [shape: f32[2,16,256], index: 3, kind: output, shape index: {}]  }
   0x1 LB: > { %s436_s13 = sadd.s32 4294967295, %s500_s12   ;;  %p440_p0 = scmp.ge.s32.totalorder %s500_s12, 1  ;;  %s500_s12 = sphi %s525_s12, %s13_s12  }
   0x2   : > { %p137_p1 = scmp.lt.s32.totalorder %s500_s12, 3 }
   0x4   : > { %p138_p2 = pnand %p440_p0, %p137_p1 }
   0x5   : > { %p161_p3 = scmp.lt.s32.totalorder (!%p138_p2), %s436_s13, 1 }
   0x6   : > { %141 = sbr.rel (%p138_p2) target bundleno = 719 (0x2cf), region = 32 }
   0xb   : > { %s573_s13 = smov (!%p161_p3, %s436_s13), 1  ;;  %v502_v10 = vmov 0.0   ;;  %vm503_vm0 = vmmov 0   ;;  %v187_v15 = vld [vmem:[%s569_s1] sm:$0x3]  ;;  %vm188_vm1 = vcmask 130048  }
   0xc   : > { %s453_s14 = sshll.u32 %s573_s13, 5  ;;  %461 = vmatprep.subr.mxu0 %v502_v10  ;;  %465 = vmatprep.mubr.msk.f32.mxu0 %vm503_vm0, %v502_v10  ;;  %v263_v16 = vld [vmem:[%s570_s2] sm:$0xff]  ;;  %vm265_vm2 = vcmask 15360   ;;  %vm272_vm3 = vcmask 1041408   ;;  %v264_v20 = vld [vmem:[%s570_s2 + $0x8] sm:$0xff]  ;;  %v504_v21 = vmov 0  }
   0xd   : > { %s165_s17 = scalar_lea.vmem %s568_s0, %s453_s14  ;;  %470 = vmatprep.mubr.msk.f32.mxu1 %vm265_vm2, %v263_v16  ;;  %484 = vset.pattern.permute.xlu1 %v504_v21  ;;  %s170_s26 = scalar_lea.vmem %s571_s3, %s453_s14 }
   0xe   : > { %v541_v0 = vld [vmem:[%s165_s17 + $0x10] sm:$0xff]  ;;  %v543_v1 = vld [vmem:[%s165_s17 + $0x18] sm:$0xff]  ;;  %v171_v2 = vld [vmem:[%s165_s17] sm:$0xff]  ;;  %485 = vset.pattern.permute.xlu0 %v504_v21 }
   0xf   : > { %v177_v3 = vmul.f32 %v541_v0, %v541_v0  ;;  %v178_v4 = vmul.f32 %v543_v1, %v543_v1  ;;  %v172_v5 = vld [vmem:[%s165_s17 + $0x8] sm:$0xff]  ;;  %v175_v6 = vmul.f32 %v171_v2, %v171_v2 }
  0x10   : > { %v176_v7 = vmul.f32 %v172_v5, %v172_v5 }
  0x11   : > { %v182_v8 = vadd.f32 %v178_v4, %v177_v3 }
  0x12   : > { %v179_v9 = vadd.f32 %v176_v7, %v175_v6 }
  0x13   : > { %183 = vadd.xlane.f32.xlu0 %v182_v8 }
  0x17   : > { %180 = vadd.xlane.f32.xlu0 %v179_v9 }
  0x9c   : > { %v184_v11 = vpop.xlane.xlu0 %183 }
  0x9d   : > { %v186_v12 = vmul.f32 0.015625, %v184_v11 }
  0x9f   : > { %462 = vmatpush3.msra.mxu0 %v186_v12 }
  0xa0   : > { %v181_v13 = vpop.xlane.xlu0 %180  ;;  %463 = vmatprep.subr.mxu0 %v502_v10 }
  0xa1   : > { %v185_v14 = vmul.f32 0.015625, %v181_v13 }
  0xa3   : > { %464 = vmatpush3.msra.mxu0 %v185_v14 }
  0xa4   : > { %466 = vmatmul.mubr.msk.f32.vlgmr.msra.gmra.mxu0 %vm188_vm1, %v187_v15 }
 0x164   : > { %v258_v17 = vpop.f32.mrf.mxu0 }
 0x165   : > { %v262_v18 = vmax.f32 %v258_v17, 0.0 }
 0x166   : > { %v467_v19 = vpop.f32.mrf.mxu0 }
 0x167   : > { %468 = vmatprep.subr.msk.mxu1 %vm272_vm3, %v262_v18 }
 0x168   : > { %469 = vmatpush3.msk.msra.mxu1 %vm272_vm3, %v262_v18 }
 0x169   : > { %471 = vmatmul.mubr.msk.f32.vlgmr.msra.gmra.mxu1 %vm265_vm2, %v264_v20 }
 0x229   : > { %v472_v22 = vpop.f32.mrf.mxu1 }
 0x22a   : > { %v450_v23 = vmul.f32 -1.442695, %v472_v22 }
 0x22b   : > { %v342_v24 = vpop.f32.mrf.mxu1 }
 0x22c   : > { %v449_v25 = vmul.f32 -1.442695, %v342_v24  ;;  %486 = vpow2.f32 %v450_v23 }
 0x22e   : > { %488 = vpow2.f32 %v449_v25 }
 0x239   : > { %v487_v26 = vpop.eup %486 }
 0x23a   : > { %v358_v29 = vadd.f32 1.0, %v487_v26 }
 0x23b   : > { %v489_v27 = vpop.eup %488 }
 0x23c   : > { %v357_v28 = vadd.f32 1.0, %v489_v27 }
 0x23e   : > { %490 = vrcp.f32 %v357_v28 }
 0x23f   : > { %492 = vrcp.f32 %v358_v29 }
 0x24b   : > { %v491_v30 = vpop.eup %490 }
 0x24c   : > { %365 = vperm.xlu1 %484, %v491_v30   ;;  %v493_v31 = vpop.eup %492 }
 0x250   : > { %370 = vperm.xlu1 %484, %v493_v31  }
 0x2c7   : > { %v366_v32 = vpop.permute.xlu1 %365 }
 0x2c8   : > { %v373_v33 = vmul.f32 %v366_v32, %v171_v2  ;;  %v374_v34 = vmul.f32 %v366_v32, %v172_v5 }
 0x2ca   : > { %377 = vst [vmem:[%s170_s26] sm:$0xff] %v373_v33  ;;  %378 = vst [vmem:[%s170_s26 + $0x8] sm:$0xff] %v374_v34 }
 0x2cb   : > { %v371_v35 = vpop.permute.xlu1 %370 }
 0x2cc   : > { %v375_v36 = vmul.f32 %v371_v35, %v541_v0  ;;  %v376_v37 = vmul.f32 %v371_v35, %v543_v1 }
 0x2ce   : > { %379 = vst [vmem:[%s170_s26 + $0x10] sm:$0xff] %v375_v36  ;;  %380 = vst [vmem:[%s170_s26 + $0x18] sm:$0xff] %v376_v37 }
 0x2cf PF: > { %s13_s12 = sadd.s32 1, %s500_s12  }
 0x2d0   : > { %p10_p4 = scmp.ge.s32.totalorder %s13_s12, 4  }
 0x2d2   :  { %12 = sbr.rel (!%p10_p4) target bundleno = 1 (0x1), region = 62 }

</bundles_post_ra>
